<compile_context>
chip_gen: v6e
topology: v6e:2x2x1
jax: 0.10.0
libtpu: 0.0.40
codegen_flags: <defaults>
</compile_context>

<pallas_src>
import functools

import jax
import jax.numpy as jnp
from jax.experimental import pallas as pl
from jax.experimental.pallas import tpu as pltpu

# config (cf.*) — small, deterministic sizes for this synthetic kernel
D_MODEL = 32
N_HEAD = 4
ATT_DIM = D_MODEL // N_HEAD
DROPOUT = 0.1  # eval-mode dropout == identity (see TODO below)


def _mha_kernel(q_ref, k_ref, v_ref, wq_ref, wk_ref, wv_ref, wo_ref,
                o_ref, att_ref, *, n_head, att_dim):
    # q/k/v_ref: (1, S, D); wq/wk/wv_ref: (D, H*att_dim) NN-layout; wo_ref: (D, D)
    # o_ref: (1, S, D); att_ref: (1, H, S, S)
    q = q_ref[0]  # (S, D)
    k = k_ref[0]
    v = v_ref[0]

    # Fused per-head projections: one (S,D)x(D,D) matmul each, NN layout.
    qp = jnp.dot(q, wq_ref[...], preferred_element_type=jnp.float32)
    kp = jnp.dot(k, wk_ref[...], preferred_element_type=jnp.float32)
    vp = jnp.dot(v, wv_ref[...], preferred_element_type=jnp.float32)

    inv_scale = 1.0 / float(att_dim)
    head_outs = []
    for h in range(n_head):  # static unroll, n_head is small
        sl = slice(h * att_dim, (h + 1) * att_dim)
        q_h = qp[:, sl]  # (S, att_dim)
        k_h = kp[:, sl]
        v_h = vp[:, sl]

        # scores = q_h @ k_h^T / att_dim   (NT contraction is inherent to QK^T)
        scores = jax.lax.dot_general(
            q_h, k_h,
            dimension_numbers=(((1,), (1,)), ((), ())),
            preferred_element_type=jnp.float32,
        ) * inv_scale

        # TODO(synk): optional boolean `mask` (masked_fill with -inf) not
        # implemented; this kernel covers the mask=None path of the module.
        m = jnp.max(scores, axis=-1, keepdims=True)
        e = jnp.exp(scores - m)
        probs = e / jnp.sum(e, axis=-1, keepdims=True)  # (S, S)

        att_ref[0, h] = probs.astype(att_ref.dtype)

        # TODO(synk): training-mode dropout on probs / outputs not implemented;
        # eval-mode nn.Dropout is the identity, which is what we do.
        head_outs.append(
            jnp.dot(probs, v_h, preferred_element_type=jnp.float32))

    concat = jnp.concatenate(head_outs, axis=-1)  # (S, H*att_dim) == (S, D)
    out = jnp.dot(concat, wo_ref[...], preferred_element_type=jnp.float32)
    o_ref[0] = out.astype(o_ref.dtype)


@jax.jit
def multi_head_attention(q, k, v, wq, wk, wv, wo):
    """q,k,v: (B,S,D).  wq/wk/wv: (H, att_dim, D) PyTorch Linear layout.
    wo: (D, D) PyTorch Linear layout.  Returns (output (B,S,D), atts (B,H,S,S))."""
    B, S, D = q.shape
    H, ad, _ = wq.shape

    # Fuse the per-head projection weights once, pre-transposed to NN layout:
    # wq_all[:, h*ad:(h+1)*ad] == wq[h].T, so x @ wq_all == concat_h(x @ wq[h].T)
    wq_all = jnp.transpose(wq, (2, 0, 1)).reshape(D, H * ad)
    wk_all = jnp.transpose(wk, (2, 0, 1)).reshape(D, H * ad)
    wv_all = jnp.transpose(wv, (2, 0, 1)).reshape(D, H * ad)
    wo_t = wo.T  # output = concat @ wo.T

    kernel = functools.partial(_mha_kernel, n_head=H, att_dim=ad)

    out, att = pl.pallas_call(
        kernel,
        out_shape=(
            jax.ShapeDtypeStruct((B, S, D), q.dtype),
            jax.ShapeDtypeStruct((B, H, S, S), jnp.float32),
        ),
        grid_spec=pltpu.PrefetchScalarGridSpec(
            num_scalar_prefetch=0,
            grid=(B,),
            in_specs=[
                pl.BlockSpec((1, S, D), lambda b: (b, 0, 0)),      # q
                pl.BlockSpec((1, S, D), lambda b: (b, 0, 0)),      # k
                pl.BlockSpec((1, S, D), lambda b: (b, 0, 0)),      # v
                pl.BlockSpec((D, H * ad), lambda b: (0, 0)),       # wq_all (resident)
                pl.BlockSpec((D, H * ad), lambda b: (0, 0)),       # wk_all (resident)
                pl.BlockSpec((D, H * ad), lambda b: (0, 0)),       # wv_all (resident)
                pl.BlockSpec((D, D), lambda b: (0, 0)),            # wo_t   (resident)
            ],
            out_specs=(
                pl.BlockSpec((1, S, D), lambda b: (b, 0, 0)),
                pl.BlockSpec((1, H, S, S), lambda b: (b, 0, 0, 0)),
            ),
        ),
        compiler_params=pltpu.CompilerParams(
            dimension_semantics=("parallel",)),
    )(q, k, v, wq_all, wk_all, wv_all, wo_t)

    return out, att


def _ref_mha(q, k, v, wq, wk, wv, wo):
    H, ad, _ = wq.shape
    outs, atts = [], []
    for h in range(H):
        qh = jnp.einsum("bsd,ad->bsa", q, wq[h])
        kh = jnp.einsum("bsd,ad->bsa", k, wk[h])
        vh = jnp.einsum("bsd,ad->bsa", v, wv[h])
        s = jnp.einsum("bqa,bka->bqk", qh, kh) / ad
        p = jax.nn.softmax(s, axis=-1)
        atts.append(p)
        outs.append(jnp.einsum("bqk,bka->bqa", p, vh))
    concat = jnp.concatenate(outs, axis=-1)
    out = jnp.einsum("bsf,df->bsd", concat, wo)
    return out, jnp.stack(atts, axis=1)


if __name__ == "__main__":
    key = jax.random.PRNGKey(0)
    kq, kk, kv, k1, k2, k3, k4 = jax.random.split(key, 7)

    batch, seq = 2, 8
    q = jax.random.normal(kq, (batch, seq, D_MODEL), dtype=jnp.float32)
    k = jax.random.normal(kk, (batch, seq, D_MODEL), dtype=jnp.float32)
    v = jax.random.normal(kv, (batch, seq, D_MODEL), dtype=jnp.float32)

    # Deterministic parameter init (PyTorch Linear (out, in) layout, bias=False).
    bound = 1.0 / (D_MODEL ** 0.5)
    wq = jax.random.uniform(k1, (N_HEAD, ATT_DIM, D_MODEL), jnp.float32, -bound, bound)
    wk = jax.random.uniform(k2, (N_HEAD, ATT_DIM, D_MODEL), jnp.float32, -bound, bound)
    wv = jax.random.uniform(k3, (N_HEAD, ATT_DIM, D_MODEL), jnp.float32, -bound, bound)
    wo = jax.random.uniform(k4, (D_MODEL, D_MODEL), jnp.float32, -bound, bound)

    out, att = multi_head_attention(q, k, v, wq, wk, wv, wo)
    out = jax.block_until_ready(out)
    att = jax.block_until_ready(att)

    ref_out, ref_att = _ref_mha(q, k, v, wq, wk, wv, wo)
    assert out.shape == (batch, seq, D_MODEL)
    assert att.shape == (batch, N_HEAD, seq, seq)
    assert jnp.allclose(out, ref_out, atol=1e-4, rtol=1e-4)
    assert jnp.allclose(att, ref_att, atol=1e-4, rtol=1e-4)

    print("KERNEL_OK")
</pallas_src>

<mosaic_0001>
module attributes {stable_mosaic.version = 11 : i64} {
  func.func @_mha_kernel(%arg0: i32, %arg1: memref<1x8x32xf32, #tpu.memory_space<vmem>>, %arg2: memref<1x8x32xf32, #tpu.memory_space<vmem>>, %arg3: memref<1x8x32xf32, #tpu.memory_space<vmem>>, %arg4: memref<32x32xf32, #tpu.memory_space<vmem>>, %arg5: memref<32x32xf32, #tpu.memory_space<vmem>>, %arg6: memref<32x32xf32, #tpu.memory_space<vmem>>, %arg7: memref<32x32xf32, #tpu.memory_space<vmem>>, %arg8: memref<1x8x32xf32, #tpu.memory_space<vmem>>, %arg9: memref<1x4x8x8xf32, #tpu.memory_space<vmem>>) attributes {dimension_semantics = [#tpu.dimension_semantics<parallel>], iteration_bounds = array<i64: 2>, scalar_prefetch = 0 : i64, scratch_operands = 0 : i64, tpu.core_type = #tpu.core_type<tc>, window_params = [{transform_indices = @transform_0, window_bounds = array<i64: 1, 8, 32>}, {transform_indices = @transform_1, window_bounds = array<i64: 1, 8, 32>}, {transform_indices = @transform_2, window_bounds = array<i64: 1, 8, 32>}, {pipeline_mode = #tpu.pipeline_mode<synchronous>, transform_indices = @transform_3, window_bounds = array<i64: 32, 32>}, {pipeline_mode = #tpu.pipeline_mode<synchronous>, transform_indices = @transform_4, window_bounds = array<i64: 32, 32>}, {pipeline_mode = #tpu.pipeline_mode<synchronous>, transform_indices = @transform_5, window_bounds = array<i64: 32, 32>}, {pipeline_mode = #tpu.pipeline_mode<synchronous>, transform_indices = @transform_6, window_bounds = array<i64: 32, 32>}, {transform_indices = @transform_7, window_bounds = array<i64: 1, 8, 32>}, {transform_indices = @transform_8, window_bounds = array<i64: 1, 4, 8, 8>}]} {
    %c0 = arith.constant 0 : index
    %c0_0 = arith.constant 0 : index
    %c0_1 = arith.constant 0 : index
    %0 = vector.load %arg1[%c0, %c0_0, %c0_1] : memref<1x8x32xf32, #tpu.memory_space<vmem>>, vector<1x8x32xf32>
    %1 = vector.shape_cast %0 : vector<1x8x32xf32> to vector<8x32xf32>
    %c0_2 = arith.constant 0 : index
    %c0_3 = arith.constant 0 : index
    %c0_4 = arith.constant 0 : index
    %2 = vector.load %arg2[%c0_2, %c0_3, %c0_4] : memref<1x8x32xf32, #tpu.memory_space<vmem>>, vector<1x8x32xf32>
    %3 = vector.shape_cast %2 : vector<1x8x32xf32> to vector<8x32xf32>
    %c0_5 = arith.constant 0 : index
    %c0_6 = arith.constant 0 : index
    %c0_7 = arith.constant 0 : index
    %4 = vector.load %arg3[%c0_5, %c0_6, %c0_7] : memref<1x8x32xf32, #tpu.memory_space<vmem>>, vector<1x8x32xf32>
    %5 = vector.shape_cast %4 : vector<1x8x32xf32> to vector<8x32xf32>
    %c0_8 = arith.constant 0 : index
    %c0_9 = arith.constant 0 : index
    %6 = vector.load %arg4[%c0_8, %c0_9] : memref<32x32xf32, #tpu.memory_space<vmem>>, vector<32x32xf32>
    %cst = arith.constant dense<0.000000e+00> : vector<8x32xf32>
    %7 = tpu.matmul %1, %6, %cst {dimension_numbers = #tpu.dot_dimension_numbers<[1], [0], [0], [1], [0, 0, 1, 1], [], []>} : vector<8x32xf32>, vector<32x32xf32>, vector<8x32xf32> -> vector<8x32xf32>
    %c0_10 = arith.constant 0 : index
    %c0_11 = arith.constant 0 : index
    %8 = vector.load %arg5[%c0_10, %c0_11] : memref<32x32xf32, #tpu.memory_space<vmem>>, vector<32x32xf32>
    %cst_12 = arith.constant dense<0.000000e+00> : vector<8x32xf32>
    %9 = tpu.matmul %3, %8, %cst_12 {dimension_numbers = #tpu.dot_dimension_numbers<[1], [0], [0], [1], [0, 0, 1, 1], [], []>} : vector<8x32xf32>, vector<32x32xf32>, vector<8x32xf32> -> vector<8x32xf32>
    %c0_13 = arith.constant 0 : index
    %c0_14 = arith.constant 0 : index
    %10 = vector.load %arg6[%c0_13, %c0_14] : memref<32x32xf32, #tpu.memory_space<vmem>>, vector<32x32xf32>
    %cst_15 = arith.constant dense<0.000000e+00> : vector<8x32xf32>
    %11 = tpu.matmul %5, %10, %cst_15 {dimension_numbers = #tpu.dot_dimension_numbers<[1], [0], [0], [1], [0, 0, 1, 1], [], []>} : vector<8x32xf32>, vector<32x32xf32>, vector<8x32xf32> -> vector<8x32xf32>
    %12 = vector.extract_strided_slice %7 {offsets = [0, 0], sizes = [8, 8], strides = [1, 1]} : vector<8x32xf32> to vector<8x8xf32>
    %13 = vector.extract_strided_slice %9 {offsets = [0, 0], sizes = [8, 8], strides = [1, 1]} : vector<8x32xf32> to vector<8x8xf32>
    %14 = vector.extract_strided_slice %11 {offsets = [0, 0], sizes = [8, 8], strides = [1, 1]} : vector<8x32xf32> to vector<8x8xf32>
    %cst_16 = arith.constant dense<0.000000e+00> : vector<8x8xf32>
    %15 = tpu.matmul %12, %13, %cst_16 {dimension_numbers = #tpu.dot_dimension_numbers<[1], [1], [0], [0], [0, 0, 1, 0], [], []>} : vector<8x8xf32>, vector<8x8xf32>, vector<8x8xf32> -> vector<8x8xf32>
    %cst_17 = arith.constant 1.250000e-01 : f32
    %16 = vector.broadcast %cst_17 : f32 to vector<8x8xf32>
    %17 = arith.mulf %15, %16 : vector<8x8xf32>
    %cst_18 = arith.constant dense<0xFF800000> : vector<8xf32>
    %18 = vector.multi_reduction <maximumf>, %17, %cst_18 [1] : vector<8x8xf32> to vector<8xf32>
    %19 = vector.shape_cast %18 : vector<8xf32> to vector<8x1xf32>
    %20 = vector.broadcast %19 : vector<8x1xf32> to vector<8x8xf32>
    %21 = arith.subf %17, %20 : vector<8x8xf32>
    %22 = math.exp %21 : vector<8x8xf32>
    %cst_19 = arith.constant dense<0.000000e+00> : vector<8xf32>
    %23 = vector.multi_reduction <add>, %22, %cst_19 [1] : vector<8x8xf32> to vector<8xf32>
    %24 = vector.shape_cast %23 : vector<8xf32> to vector<8x1xf32>
    %25 = vector.broadcast %24 : vector<8x1xf32> to vector<8x8xf32>
    %26 = arith.divf %22, %25 : vector<8x8xf32>
    %c0_20 = arith.constant 0 : index
    %c0_21 = arith.constant 0 : index
    %c0_22 = arith.constant 0 : index
    %c0_23 = arith.constant 0 : index
    %27 = vector.load %arg9[%c0_20, %c0_21, %c0_22, %c0_23] : memref<1x4x8x8xf32, #tpu.memory_space<vmem>>, vector<1x1x8x8xf32>
    %28 = vector.shape_cast %27 : vector<1x1x8x8xf32> to vector<8x8xf32>
    %29 = vector.shape_cast %26 : vector<8x8xf32> to vector<1x1x8x8xf32>
    tpu.vector_store %arg9[%c0_20, %c0_21, %c0_22, %c0_23], %29 {strides = array<i32>} : memref<1x4x8x8xf32, #tpu.memory_space<vmem>>, vector<1x1x8x8xf32>,
    %cst_24 = arith.constant dense<0.000000e+00> : vector<8x8xf32>
    %30 = tpu.matmul %26, %14, %cst_24 {dimension_numbers = #tpu.dot_dimension_numbers<[1], [0], [0], [1], [0, 0, 1, 1], [], []>} : vector<8x8xf32>, vector<8x8xf32>, vector<8x8xf32> -> vector<8x8xf32>
    %31 = vector.extract_strided_slice %7 {offsets = [0, 8], sizes = [8, 8], strides = [1, 1]} : vector<8x32xf32> to vector<8x8xf32>
    %32 = vector.extract_strided_slice %9 {offsets = [0, 8], sizes = [8, 8], strides = [1, 1]} : vector<8x32xf32> to vector<8x8xf32>
    %33 = vector.extract_strided_slice %11 {offsets = [0, 8], sizes = [8, 8], strides = [1, 1]} : vector<8x32xf32> to vector<8x8xf32>
    %cst_25 = arith.constant dense<0.000000e+00> : vector<8x8xf32>
    %34 = tpu.matmul %31, %32, %cst_25 {dimension_numbers = #tpu.dot_dimension_numbers<[1], [1], [0], [0], [0, 0, 1, 0], [], []>} : vector<8x8xf32>, vector<8x8xf32>, vector<8x8xf32> -> vector<8x8xf32>
    %cst_26 = arith.constant 1.250000e-01 : f32
    %35 = vector.broadcast %cst_26 : f32 to vector<8x8xf32>
    %36 = arith.mulf %34, %35 : vector<8x8xf32>
    %cst_27 = arith.constant dense<0xFF800000> : vector<8xf32>
    %37 = vector.multi_reduction <maximumf>, %36, %cst_27 [1] : vector<8x8xf32> to vector<8xf32>
    %38 = vector.shape_cast %37 : vector<8xf32> to vector<8x1xf32>
    %39 = vector.broadcast %38 : vector<8x1xf32> to vector<8x8xf32>
    %40 = arith.subf %36, %39 : vector<8x8xf32>
    %41 = math.exp %40 : vector<8x8xf32>
    %cst_28 = arith.constant dense<0.000000e+00> : vector<8xf32>
    %42 = vector.multi_reduction <add>, %41, %cst_28 [1] : vector<8x8xf32> to vector<8xf32>
    %43 = vector.shape_cast %42 : vector<8xf32> to vector<8x1xf32>
    %44 = vector.broadcast %43 : vector<8x1xf32> to vector<8x8xf32>
    %45 = arith.divf %41, %44 : vector<8x8xf32>
    %c0_29 = arith.constant 0 : index
    %c1 = arith.constant 1 : index
    %c0_30 = arith.constant 0 : index
    %c0_31 = arith.constant 0 : index
    %46 = vector.load %arg9[%c0_29, %c1, %c0_30, %c0_31] : memref<1x4x8x8xf32, #tpu.memory_space<vmem>>, vector<1x1x8x8xf32>
    %47 = vector.shape_cast %46 : vector<1x1x8x8xf32> to vector<8x8xf32>
    %48 = vector.shape_cast %45 : vector<8x8xf32> to vector<1x1x8x8xf32>
    tpu.vector_store %arg9[%c0_29, %c1, %c0_30, %c0_31], %48 {strides = array<i32>} : memref<1x4x8x8xf32, #tpu.memory_space<vmem>>, vector<1x1x8x8xf32>,
    %cst_32 = arith.constant dense<0.000000e+00> : vector<8x8xf32>
    %49 = tpu.matmul %45, %33, %cst_32 {dimension_numbers = #tpu.dot_dimension_numbers<[1], [0], [0], [1], [0, 0, 1, 1], [], []>} : vector<8x8xf32>, vector<8x8xf32>, vector<8x8xf32> -> vector<8x8xf32>
    %50 = vector.extract_strided_slice %7 {offsets = [0, 16], sizes = [8, 8], strides = [1, 1]} : vector<8x32xf32> to vector<8x8xf32>
    %51 = vector.extract_strided_slice %9 {offsets = [0, 16], sizes = [8, 8], strides = [1, 1]} : vector<8x32xf32> to vector<8x8xf32>
    %52 = vector.extract_strided_slice %11 {offsets = [0, 16], sizes = [8, 8], strides = [1, 1]} : vector<8x32xf32> to vector<8x8xf32>
    %cst_33 = arith.constant dense<0.000000e+00> : vector<8x8xf32>
    %53 = tpu.matmul %50, %51, %cst_33 {dimension_numbers = #tpu.dot_dimension_numbers<[1], [1], [0], [0], [0, 0, 1, 0], [], []>} : vector<8x8xf32>, vector<8x8xf32>, vector<8x8xf32> -> vector<8x8xf32>
    %cst_34 = arith.constant 1.250000e-01 : f32
    %54 = vector.broadcast %cst_34 : f32 to vector<8x8xf32>
    %55 = arith.mulf %53, %54 : vector<8x8xf32>
    %cst_35 = arith.constant dense<0xFF800000> : vector<8xf32>
    %56 = vector.multi_reduction <maximumf>, %55, %cst_35 [1] : vector<8x8xf32> to vector<8xf32>
    %57 = vector.shape_cast %56 : vector<8xf32> to vector<8x1xf32>
    %58 = vector.broadcast %57 : vector<8x1xf32> to vector<8x8xf32>
    %59 = arith.subf %55, %58 : vector<8x8xf32>
    %60 = math.exp %59 : vector<8x8xf32>
    %cst_36 = arith.constant dense<0.000000e+00> : vector<8xf32>
    %61 = vector.multi_reduction <add>, %60, %cst_36 [1] : vector<8x8xf32> to vector<8xf32>
    %62 = vector.shape_cast %61 : vector<8xf32> to vector<8x1xf32>
    %63 = vector.broadcast %62 : vector<8x1xf32> to vector<8x8xf32>
    %64 = arith.divf %60, %63 : vector<8x8xf32>
    %c0_37 = arith.constant 0 : index
    %c2 = arith.constant 2 : index
    %c0_38 = arith.constant 0 : index
    %c0_39 = arith.constant 0 : index
    %65 = vector.load %arg9[%c0_37, %c2, %c0_38, %c0_39] : memref<1x4x8x8xf32, #tpu.memory_space<vmem>>, vector<1x1x8x8xf32>
    %66 = vector.shape_cast %65 : vector<1x1x8x8xf32> to vector<8x8xf32>
    %67 = vector.shape_cast %64 : vector<8x8xf32> to vector<1x1x8x8xf32>
    tpu.vector_store %arg9[%c0_37, %c2, %c0_38, %c0_39], %67 {strides = array<i32>} : memref<1x4x8x8xf32, #tpu.memory_space<vmem>>, vector<1x1x8x8xf32>,
    %cst_40 = arith.constant dense<0.000000e+00> : vector<8x8xf32>
    %68 = tpu.matmul %64, %52, %cst_40 {dimension_numbers = #tpu.dot_dimension_numbers<[1], [0], [0], [1], [0, 0, 1, 1], [], []>} : vector<8x8xf32>, vector<8x8xf32>, vector<8x8xf32> -> vector<8x8xf32>
    %69 = vector.extract_strided_slice %7 {offsets = [0, 24], sizes = [8, 8], strides = [1, 1]} : vector<8x32xf32> to vector<8x8xf32>
    %70 = vector.extract_strided_slice %9 {offsets = [0, 24], sizes = [8, 8], strides = [1, 1]} : vector<8x32xf32> to vector<8x8xf32>
    %71 = vector.extract_strided_slice %11 {offsets = [0, 24], sizes = [8, 8], strides = [1, 1]} : vector<8x32xf32> to vector<8x8xf32>
    %cst_41 = arith.constant dense<0.000000e+00> : vector<8x8xf32>
    %72 = tpu.matmul %69, %70, %cst_41 {dimension_numbers = #tpu.dot_dimension_numbers<[1], [1], [0], [0], [0, 0, 1, 0], [], []>} : vector<8x8xf32>, vector<8x8xf32>, vector<8x8xf32> -> vector<8x8xf32>
    %cst_42 = arith.constant 1.250000e-01 : f32
    %73 = vector.broadcast %cst_42 : f32 to vector<8x8xf32>
    %74 = arith.mulf %72, %73 : vector<8x8xf32>
    %cst_43 = arith.constant dense<0xFF800000> : vector<8xf32>
    %75 = vector.multi_reduction <maximumf>, %74, %cst_43 [1] : vector<8x8xf32> to vector<8xf32>
    %76 = vector.shape_cast %75 : vector<8xf32> to vector<8x1xf32>
    %77 = vector.broadcast %76 : vector<8x1xf32> to vector<8x8xf32>
    %78 = arith.subf %74, %77 : vector<8x8xf32>
    %79 = math.exp %78 : vector<8x8xf32>
    %cst_44 = arith.constant dense<0.000000e+00> : vector<8xf32>
    %80 = vector.multi_reduction <add>, %79, %cst_44 [1] : vector<8x8xf32> to vector<8xf32>
    %81 = vector.shape_cast %80 : vector<8xf32> to vector<8x1xf32>
    %82 = vector.broadcast %81 : vector<8x1xf32> to vector<8x8xf32>
    %83 = arith.divf %79, %82 : vector<8x8xf32>
    %c0_45 = arith.constant 0 : index
    %c3 = arith.constant 3 : index
    %c0_46 = arith.constant 0 : index
    %c0_47 = arith.constant 0 : index
    %84 = vector.load %arg9[%c0_45, %c3, %c0_46, %c0_47] : memref<1x4x8x8xf32, #tpu.memory_space<vmem>>, vector<1x1x8x8xf32>
    %85 = vector.shape_cast %84 : vector<1x1x8x8xf32> to vector<8x8xf32>
    %86 = vector.shape_cast %83 : vector<8x8xf32> to vector<1x1x8x8xf32>
    tpu.vector_store %arg9[%c0_45, %c3, %c0_46, %c0_47], %86 {strides = array<i32>} : memref<1x4x8x8xf32, #tpu.memory_space<vmem>>, vector<1x1x8x8xf32>,
    %cst_48 = arith.constant dense<0.000000e+00> : vector<8x8xf32>
    %87 = tpu.matmul %83, %71, %cst_48 {dimension_numbers = #tpu.dot_dimension_numbers<[1], [0], [0], [1], [0, 0, 1, 1], [], []>} : vector<8x8xf32>, vector<8x8xf32>, vector<8x8xf32> -> vector<8x8xf32>
    %88 = tpu.concatenate %30, %49, %68, %87 in 1 : vector<8x8xf32>, vector<8x8xf32>, vector<8x8xf32>, vector<8x8xf32> -> vector<8x32xf32>
    %c0_49 = arith.constant 0 : index
    %c0_50 = arith.constant 0 : index
    %89 = vector.load %arg7[%c0_49, %c0_50] : memref<32x32xf32, #tpu.memory_space<vmem>>, vector<32x32xf32>
    %cst_51 = arith.constant dense<0.000000e+00> : vector<8x32xf32>
    %90 = tpu.matmul %88, %89, %cst_51 {dimension_numbers = #tpu.dot_dimension_numbers<[1], [0], [0], [1], [0, 0, 1, 1], [], []>} : vector<8x32xf32>, vector<32x32xf32>, vector<8x32xf32> -> vector<8x32xf32>
    %c0_52 = arith.constant 0 : index
    %c0_53 = arith.constant 0 : index
    %c0_54 = arith.constant 0 : index
    %91 = vector.load %arg8[%c0_52, %c0_53, %c0_54] : memref<1x8x32xf32, #tpu.memory_space<vmem>>, vector<1x8x32xf32>
    %92 = vector.shape_cast %91 : vector<1x8x32xf32> to vector<8x32xf32>
    %93 = vector.shape_cast %90 : vector<8x32xf32> to vector<1x8x32xf32>
    tpu.vector_store %arg8[%c0_52, %c0_53, %c0_54], %93 {strides = array<i32>} : memref<1x8x32xf32, #tpu.memory_space<vmem>>, vector<1x8x32xf32>,
    return
  }
  func.func @transform_0(%arg0: i32) -> (i32, i32, i32) {
    %c0_i32 = arith.constant 0 : i32
    %c0_i32_0 = arith.constant 0 : i32
    %c0_i32_1 = arith.constant 0 : i32
    return %arg0, %c0_i32, %c0_i32_0 : i32, i32, i32
  }
  func.func @transform_1(%arg0: i32) -> (i32, i32, i32) {
    %c0_i32 = arith.constant 0 : i32
    %c0_i32_0 = arith.constant 0 : i32
    %c0_i32_1 = arith.constant 0 : i32
    return %arg0, %c0_i32, %c0_i32_0 : i32, i32, i32
  }
  func.func @transform_2(%arg0: i32) -> (i32, i32, i32) {
    %c0_i32 = arith.constant 0 : i32
    %c0_i32_0 = arith.constant 0 : i32
    %c0_i32_1 = arith.constant 0 : i32
    return %arg0, %c0_i32, %c0_i32_0 : i32, i32, i32
  }
  func.func @transform_3(%arg0: i32) -> (i32, i32) {
    %c0_i32 = arith.constant 0 : i32
    %c0_i32_0 = arith.constant 0 : i32
    %c0_i32_1 = arith.constant 0 : i32
    return %c0_i32, %c0_i32_0 : i32, i32
  }
  func.func @transform_4(%arg0: i32) -> (i32, i32) {
    %c0_i32 = arith.constant 0 : i32
    %c0_i32_0 = arith.constant 0 : i32
    %c0_i32_1 = arith.constant 0 : i32
    return %c0_i32, %c0_i32_0 : i32, i32
  }
  func.func @transform_5(%arg0: i32) -> (i32, i32) {
    %c0_i32 = arith.constant 0 : i32
    %c0_i32_0 = arith.constant 0 : i32
    %c0_i32_1 = arith.constant 0 : i32
    return %c0_i32, %c0_i32_0 : i32, i32
  }
  func.func @transform_6(%arg0: i32) -> (i32, i32) {
    %c0_i32 = arith.constant 0 : i32
    %c0_i32_0 = arith.constant 0 : i32
    %c0_i32_1 = arith.constant 0 : i32
    return %c0_i32, %c0_i32_0 : i32, i32
  }
  func.func @transform_7(%arg0: i32) -> (i32, i32, i32) {
    %c0_i32 = arith.constant 0 : i32
    %c0_i32_0 = arith.constant 0 : i32
    %c0_i32_1 = arith.constant 0 : i32
    return %arg0, %c0_i32, %c0_i32_0 : i32, i32, i32
  }
  func.func @transform_8(%arg0: i32) -> (i32, i32, i32, i32) {
    %c0_i32 = arith.constant 0 : i32
    %c0_i32_0 = arith.constant 0 : i32
    %c0_i32_1 = arith.constant 0 : i32
    %c0_i32_2 = arith.constant 0 : i32
    return %arg0, %c0_i32, %c0_i32_0, %c0_i32_1 : i32, i32, i32, i32
  }
}

</mosaic_0001>

<bundles_post_ra>
// kernel: multi_head_attention.1
= control target key start
LH: loop header
LB: loop body
LE: loop exit
PB: predicated region body
PF: predicated region fallthrough
CT: control target
= control target key end

     0   :  { %s2166_s0 = inlined_call_operand.vmem [shape: f32[2,8,32], index: 0, kind: input, shape index: {}]   ;;  %s2167_s1 = inlined_call_operand.vmem [shape: f32[2,8,32], index: 1, kind: input, shape index: {}]   ;;  %s2168_s2 = inlined_call_operand.vmem [shape: f32[2,8,32], index: 2, kind: input, shape index: {}]   ;;  %s2169_s3 = inlined_call_operand.vmem [shape: f32[32,32], index: 3, kind: input, shape index: {}]   ;;  %s2170_s4 = inlined_call_operand.vmem [shape: f32[32,32], index: 4, kind: input, shape index: {}]   ;;  %s2171_s5 = inlined_call_operand.vmem [shape: f32[32,32], index: 5, kind: input, shape index: {}]   ;;  %s2172_s6 = inlined_call_operand.vmem [shape: f32[32,32], index: 6, kind: input, shape index: {}]   ;;  %s2173_s7 = inlined_call_operand.hbm [shape: f32[2,8,32], index: 7, kind: output, shape index: {0}]   ;;  %s2174_s8 = inlined_call_operand.hbm [shape: f32[2,4,8,8], index: 8, kind: output, shape index: {1}]  }
   0x1   :  { %2175 = sst [smem:[#allocation8_spill]] %s2166_s0 }
   0x2   :  { %14 = vsyncpa [#allocation3], 0 }
   0x3   :  { %16 = vsyncpa [#allocation3 + $0x1], 0 }
   0x4   :  { %17 = vsyncpa [#allocation5], 0 }
   0x5   :  { %19 = vsyncpa [#allocation5 + $0x1], 0  ;;  %s1867_s27 = smov 0   ;;  %s1869_s28 = smov 0  }
   0x6   :  { %s1871_s29 = smov 0   ;;  %s1873_s30 = smov 0  }
   0x7 LB: > { %s1888_s9 = sadd.s32 4294967295, %s1809_s30   ;;  %s1494_s10 = sadd.s32 4294967294, %s1809_s30   ;;  %s1809_s30 = sphi %s1873_s30, %s2183_s30   ;;  %s1805_s29 = sphi %s1871_s29, %s2182_s29   ;;  %s1801_s28 = sphi %s1869_s28, %s2181_s28   ;;  %s1797_s27 = sphi %s1867_s27, %s2180_s27  }
   0x8   : > { %s1892_s11 = sadd.s32 1, %s1809_s30   ;;  %s194_s12 = sadd.s32 1, %s1805_s29 }
   0x9   : > { %s191_s13 = ssub.s32 %s1809_s30, %s1892_s11  ;;  %p204_p0 = scmp.ne.s32.totalorder %s1805_s29, %s1801_s28 }
   0xa   : > { %p192_p1 = scmp.eq.s32.totalorder %s191_s13, 0  ;;  %p205_p2 = scmp.eq.s32.totalorder %s1888_s9, 1 }
   0xb   : > { %p210_p3 = scmp.ne.s32.totalorder %s1801_s28, %s1797_s27  ;;  %p211_p4 = scmp.eq.s32.totalorder %s1494_s10, 1 }
   0xc   : > { %s1903_s14 = scalar_select %p192_p1, %s1805_s29, %s194_s12  }
   0xd   : > { %p1905_p5 = por %p205_p2, %p204_p0  ;;  %p1909_p6 = por %p211_p4, %p210_p3 }
   0xe   : > { %p1497_p7 = scmp.ge.s32.totalorder %s1809_s30, 1  ;;  %p288_p8 = scmp.lt.s32.totalorder %s1809_s30, 3 }
  0x10   : > { %p289_p9 = pnand %p1497_p7, %p288_p8 }
  0x11   : > { %p334_p10 = scmp.lt.s32.totalorder (!%p289_p9), %s1888_s9, 1  ;;  %s2178_s0 = sld [smem:[#allocation8_spill]] (!%p289_p9) }
  0x12   : > { %292 = sbr.rel (%p289_p9) target bundleno = 1827 (0x723), region = 48  ;;  %s1813_s12 = smov (!%p289_p9), 120  }
  0x13   : > { %s1814_s13 = smov (!%p289_p9), 112   ;;  %s1815_s18 = smov (!%p289_p9), 104  }
  0x14   : > { %s1816_s19 = smov (!%p289_p9), 8   ;;  %s1817_s20 = smov (!%p289_p9), 16  }
  0x17   : > { %v430_v0 = vld [vmem:[%s2170_s4 + $0x18] sm:$0xff]  ;;  %v1811_v2 = vmov 0.0   ;;  %v429_v3 = vld [vmem:[%s2170_s4 + $0x10] sm:$0xff]  ;;  %s335_s25 = scalar_select %p334_p10, %s1888_s9, 1  ;;  %v428_v5 = vld [vmem:[%s2170_s4 + $0x8] sm:$0xff]  ;;  %vm353_vm0 = vcmask 261120  }
  0x18   : > { %v352_v1 = vld [vmem:[%s2169_s3 + $0x18] sm:$0xff]  ;;  %1577 = vmatprep.subr.mxu1 %v1811_v2  ;;  %1566 = vmatprep.subr.mxu0 %v1811_v2  ;;  %v351_v4 = vld [vmem:[%s2169_s3 + $0x10] sm:$0xff]  ;;  %v350_v6 = vld [vmem:[%s2169_s3 + $0x8] sm:$0xff]  ;;  %vm1812_vm1 = vmmov 0   ;;  %vm581_vm2 = vcmask 64512   ;;  %vm1262_vm3 = vcmask 130048  }
  0x19   : > { %1578 = vmatpush3.msra.mxu1 %v430_v0  ;;  %1567 = vmatpush3.msra.mxu0 %v352_v1  ;;  %s1939_s17 = sshll.u32 %s335_s25, 3  ;;  %v427_v7 = vld [vmem:[%s2170_s4] sm:$0xff]  ;;  %v507_v15 = vld [vmem:[%s2171_s5 + $0x18] sm:$0xff]  ;;  %v506_v16 = vld [vmem:[%s2171_s5 + $0x10] sm:$0xff]  ;;  %vm1264_vm4 = vcmask 195584  }
  0x1a   : > { %1579 = vmatprep.subr.mxu1 %v1811_v2  ;;  %1568 = vmatprep.subr.mxu0 %v1811_v2  ;;  %s341_s22 = scalar_lea.vmem %s2167_s1, %s1939_s17  ;;  %s337_s26 = scalar_lea.vmem %s2178_s0, %s1939_s17  ;;  %v349_v9 = vld [vmem:[%s2169_s3] sm:$0xff]  ;;  %v505_v17 = vld [vmem:[%s2171_s5 + $0x8] sm:$0xff] }
  0x1b   : > { %1580 = vmatpush3.msra.mxu1 %v429_v3  ;;  %1569 = vmatpush3.msra.mxu0 %v351_v4  ;;  %v347_v8 = vld [vmem:[%s341_s22] sm:$0xff]  ;;  %s345_s10 = scalar_lea.vmem %s2168_s2, %s1939_s17  ;;  %s2015_s17 = sand.u32 1, %s1801_s28  }
  0x1c   : > { %1581 = vmatprep.subr.mxu1 %v1811_v2  ;;  %1570 = vmatprep.subr.mxu0 %v1811_v2  ;;  %v346_v10 = vld [vmem:[%s337_s26] sm:$0xff]  ;;  %s1499_s21 = sshll.u32 %s2015_s17, 5 }
  0x1d   : > { %1582 = vmatpush3.msra.mxu1 %v428_v5  ;;  %1571 = vmatpush3.msra.mxu0 %v350_v6  ;;  %v504_v18 = vld [vmem:[%s2171_s5] sm:$0xff]  ;;  %s2026_s22 = scalar_lea.vmem [#allocation4], %s1499_s21  ;;  %s1818_s21 = smov 24  }
  0x1e   : > { %1583 = vmatprep.subr.mxu1 %v1811_v2  ;;  %1585 = vmatprep.mubr.msk.f32.mxu1 %vm1812_vm1, %v1811_v2  ;;  %v348_v19 = vld [vmem:[%s345_s10] sm:$0xff]  ;;  %s1819_s10 = smov [#allocation4]  }
  0x1f   : > { %1584 = vmatpush3.msra.mxu1 %v427_v7  ;;  %1572 = vmatprep.subr.mxu0 %v1811_v2 }
  0x20   : > { %1586 = vmatmul.mubr.msk.f32.vlgmr.msra.gmra.mxu1 %vm353_vm0, %v347_v8  ;;  %1573 = vmatpush3.msra.mxu0 %v349_v9 }
  0x21   : > { %1574 = vmatprep.mubr.msk.f32.mxu0 %vm1812_vm1, %v1811_v2  ;;  %1599 = vmatprep.subr.mxu1 %v1811_v2 }
  0x22   : > { %1575 = vmatmul.mubr.msk.f32.vlgmr.msra.gmra.mxu0 %vm353_vm0, %v346_v10  ;;  %1601 = vmatprep.mubr.msk.f32.mxu1 %vm1812_vm1, %v1811_v2 }
  0x23   : > { %1588 = vmatprep.subr.mxu0 %v1811_v2  ;;  %1596 = vmatprep.mubr.msk.f32.mxu0 %vm1812_vm1, %v1811_v2 }
  0x24   : > { %1589 = vmatpush3.msra.mxu0 %v507_v15 }
  0x25   : > { %1590 = vmatprep.subr.mxu0 %v1811_v2 }
  0x26   : > { %1591 = vmatpush3.msra.mxu0 %v506_v16 }
  0x27   : > { %1592 = vmatprep.subr.mxu0 %v1811_v2 }
  0x28   : > { %1593 = vmatpush3.msra.mxu0 %v505_v17 }
  0x29   : > { %1594 = vmatprep.subr.mxu0 %v1811_v2 }
  0x2a   : > { %1595 = vmatpush3.msra.mxu0 %v504_v18  ;;  %v1269_v18 = vld [vmem:[%s2172_s6 + $0x18] sm:$0xff] }
  0x2b   : > { %1597 = vmatmul.mubr.msk.f32.vlgmr.msra.gmra.mxu0 %vm353_vm0, %v348_v19  ;;  %1619 = vmatprep.subr.mxu0 %v1811_v2  ;;  %v1268_v19 = vld [vmem:[%s2172_s6 + $0x10] sm:$0xff] }
  0x2c   : > { %1621 = vmatprep.mubr.msk.f32.mxu0 %vm1812_vm1, %v1811_v2 }
  0xe0   : > { %v500_v11 = vpop.f32.mrf.mxu1 }
  0xe1   : > { %746 = vrot.lane.b32.xlu1 %v500_v11, %s1813_s12  ;;  %1600 = vmatpush3.xpose.msk.msra.mxu1 %vm581_vm2, %v500_v11 }
  0xe2   : > { %v423_v12 = vpop.f32.mrf.mxu0  ;;  %v1587_v13 = vpop.f32.mrf.mxu1  ;;  %1604 = vmatprep.subr.mxu1 %v1811_v2 }
  0xe4   : > { %v1576_v14 = vpop.f32.mrf.mxu0  ;;  %1602 = vmatmul.mubr.msk.f32.vlgmr.msra.gmra.mxu1 %vm581_vm2, %v423_v12 }
  0xe5   : > { %744 = vrot.lane.b32.xlu1 %v423_v12, %s1813_s12  ;;  %1606 = vmatprep.mubr.msk.f32.mxu1 %vm1812_vm1, %v1811_v2 }
  0xe9   : > { %913 = vrot.lane.b32.xlu1 %v423_v12, %s1814_s13 }
  0xeb   : > { %v2006_v29 = vpop.f32.mrf.mxu0 }
  0xec   : > { %1605 = vmatpush3.msra.mxu1 %v2006_v29 }
  0xed   : > { %1083 = vrot.lane.b32.xlu1 %v500_v11, %s1815_s18  ;;  %v1598_v30 = vpop.f32.mrf.mxu0  ;;  %1609 = vmatprep.subr.mxu1 %v1811_v2 }
  0xf1   : > { %1081 = vrot.lane.b32.xlu1 %v423_v12, %s1815_s18 }
 0x153   : > { %v747_v31 = vpop.permute.xlu1 %746 }
 0x157   : > { %v745_v32 = vpop.permute.xlu1 %744 }
 0x15b   : > { %v914_v33 = vpop.permute.xlu1 %913 }
 0x15f   : > { %v1084_v36 = vpop.permute.xlu1 %1083 }
 0x163   : > { %v1082_v37 = vpop.permute.xlu1 %1081 }
 0x1a4   : > { %v654_v20 = vpop.f32.mrf.mxu1 }
 0x1a5   : > { %v658_v21 = vmul.f32 0.125, %v654_v20  ;;  %v1267_v20 = vld [vmem:[%s2172_s6 + $0x8] sm:$0xff] }
 0x1a6   : > { %v1603_v22 = vpop.f32.mrf.mxu1 }
 0x1a7   : > { %v659_v23 = vsel %vm581_vm2, %v658_v21, -inf }
 0x1a8   : > { %660 = vmax.xlane.f32.xlu0 %v659_v23 }
 0x231   : > { %v661_v24 = vpop.xlane.xlu0 %660 }
 0x232   : > { %v662_v25 = vsub.f32 %v658_v21, %v661_v24  ;;  %v1266_v21 = vld [vmem:[%s2172_s6] sm:$0xff] }
 0x234   : > { %v663_v26 = vmul.f32 1.442695, %v662_v25 }
 0x236   : > { %1703 = vpow2.f32 %v663_v26 }
 0x243   : > { %v1704_v27 = vpop.eup %1703 }
 0x244   : > { %v665_v28 = vsel %vm581_vm2, %v1704_v27, 0.0 }
 0x245   : > { %666 = vadd.xlane.f32.xlu0 %v665_v28 }
 0x25b   : > { %915 = vrot.lane.b32.xlu0 %v500_v11, %s1814_s13 }
 0x2ce   : > { %v667_v34 = vpop.xlane.xlu0 %666 }
 0x2cf   : > { %1705 = vrcp.f32 %v667_v34 }
 0x2d2   : > { %v916_v35 = vpop.permute.xlu0 %915 }
 0x2d3   : > { %1620 = vmatpush3.xpose.msk.msra.mxu0 %vm581_vm2, %v916_v35 }
 0x2d4   : > { %1629 = vmatprep.subr.mxu0 %v1811_v2 }
 0x2d6   : > { %1622 = vmatmul.mubr.msk.f32.vlgmr.msra.gmra.mxu0 %vm581_vm2, %v914_v33 }
 0x2d7   : > { %1630 = vmatpush3.xpose.msk.msra.mxu0 %vm581_vm2, %v1084_v36  ;;  %1631 = vmatprep.mubr.msk.f32.mxu0 %vm1812_vm1, %v1811_v2 }
 0x2d8   : > { %1639 = vmatprep.subr.mxu0 %v1811_v2 }
 0x2da   : > { %1632 = vmatmul.mubr.msk.f32.vlgmr.msra.gmra.mxu0 %vm581_vm2, %v1082_v37 }
 0x2db   : > { %1647 = vmatprep.mubr.msk.f32.mxu0 %vm1812_vm1, %v1811_v2  ;;  %1640 = vmatpush3.msra.mxu0 %v1269_v18 }
 0x2dc   : > { %v1706_v38 = vpop.eup %1705  ;;  %1641 = vmatprep.subr.mxu0 %v1811_v2 }
 0x2dd   : > { %v669_v39 = vmul.f32 %v1706_v38, %v1704_v27  ;;  %1642 = vmatpush3.msra.mxu0 %v1268_v19 }
 0x2de   : > { %1643 = vmatprep.subr.mxu0 %v1811_v2 }
 0x2df   : > { %1607 = vmatmul.mubr.msk.f32.vlgmr.msra.gmra.mxu1 %vm581_vm2, %v669_v39  ;;  %670 = vst.msk [vmem:[%s2026_s22] sm:$0xff] %vm581_vm2, %v669_v39  ;;  %1644 = vmatpush3.msra.mxu0 %v1267_v20 }
 0x2e0   : > { %1610 = vmatpush3.xpose.msk.msra.mxu1 %vm581_vm2, %v747_v31  ;;  %1611 = vmatprep.mubr.msk.f32.mxu1 %vm1812_vm1, %v1811_v2 }
 0x2e1   : > { %1614 = vmatprep.subr.mxu1 %v1811_v2  ;;  %1645 = vmatprep.subr.mxu0 %v1811_v2 }
 0x2e2   : > { %1646 = vmatpush3.msra.mxu0 %v1266_v21 }
 0x2e3   : > { %1612 = vmatmul.mubr.msk.f32.vlgmr.msra.gmra.mxu1 %vm581_vm2, %v745_v32 }
 0x2e4   : > { %1616 = vmatprep.mubr.msk.f32.mxu1 %vm1812_vm1, %v1811_v2 }
 0x396   : > { %v987_v40 = vpop.f32.mrf.mxu0 }
 0x397   : > { %v991_v41 = vmul.f32 0.125, %v987_v40 }
 0x398   : > { %v1623_v42 = vpop.f32.mrf.mxu0 }
 0x399   : > { %v992_v43 = vsel %vm581_vm2, %v991_v41, -inf }
 0x39a   : > { %993 = vmax.xlane.f32.xlu0 %v992_v43  ;;  %v1155_v44 = vpop.f32.mrf.mxu0 }
 0x39b   : > { %v1159_v51 = vmul.f32 0.125, %v1155_v44 }
 0x39c   : > { %v1633_v45 = vpop.f32.mrf.mxu0 }
 0x39d   : > { %v1160_v53 = vsel %vm581_vm2, %v1159_v51, -inf }
 0x39f   : > { %v2038_v46 = vpop.f32.mrf.mxu1 }
 0x3a1   : > { %v1608_v47 = vpop.f32.mrf.mxu1 }
 0x3a3   : > { %v818_v48 = vpop.f32.mrf.mxu1 }
 0x3a4   : > { %v822_v49 = vmul.f32 0.125, %v818_v48 }
 0x3a5   : > { %v1613_v50 = vpop.f32.mrf.mxu1 }
 0x3a6   : > { %v823_v52 = vsel %vm581_vm2, %v822_v49, -inf }
 0x3a7   : > { %824 = vmax.xlane.f32.xlu1 %v823_v52 }
 0x3ab   : > { %1161 = vmax.xlane.f32.xlu1 %v1160_v53 }
 0x423   : > { %v994_v54 = vpop.xlane.xlu0 %993 }
 0x424   : > { %v995_v55 = vsub.f32 %v991_v41, %v994_v54 }
 0x426   : > { %v996_v56 = vmul.f32 1.442695, %v995_v55 }
 0x428   : > { %1707 = vpow2.f32 %v996_v56 }
 0x430   : > { %v825_v57 = vpop.xlane.xlu1 %824 }
 0x431   : > { %v826_v1 = vsub.f32 %v822_v49, %v825_v57 }
 0x433   : > { %v827_v3 = vmul.f32 1.442695, %v826_v1 }
 0x434   : > { %v1162_v58 = vpop.xlane.xlu1 %1161 }
 0x435   : > { %v1708_v59 = vpop.eup %1707  ;;  %v1163_v60 = vsub.f32 %v1159_v51, %v1162_v58 }
 0x436   : > { %v998_v61 = vsel %vm581_vm2, %v1708_v59, 0.0 }
 0x437   : > { %v1164_v62 = vmul.f32 1.442695, %v1163_v60  ;;  %999 = vadd.xlane.f32.xlu0 %v998_v61 }
 0x439   : > { %1709 = vpow2.f32 %v1164_v62 }
 0x43a   : > { %1711 = vpow2.f32 %v827_v3 }
 0x446   : > { %v1710_v63 = vpop.eup %1709 }
 0x447   : > { %v1166_v0 = vsel %vm581_vm2, %v1710_v63, 0.0  ;;  %v1712_v4 = vpop.eup %1711 }
 0x448   : > { %1167 = vadd.xlane.f32.xlu1 %v1166_v0  ;;  %v829_v5 = vsel %vm581_vm2, %v1712_v4, 0.0 }
 0x44d   : > { %837 = vrot.lane.b32.xlu0 %v2006_v29, %s1813_s12  ;;  %s1376_s12 = sshll.u32 %s2026_s22, 4  ;;  %s2086_s12 = int_to_ptr.vmem [resolvable:$true] %s1376_s12 }
 0x44e   : > { %s1719_s25 = scalar_lea.vmem %s2086_s12, 512 }
 0x44f   : > { %p1720_p11 = scmp.ne.s32.totalorder %s2086_s12, %s1719_s25 }
 0x451   : > { %p1721_p12 = pnand %p1720_p11, %p1905_p5 }
 0x453   : > { %p1722_p13 = pneg %p1721_p12 }
 0x459   : > { %1005 = vrot.lane.b32.xlu1 %v2006_v29, %s1814_s13  ;;  %s1529_s13 = sshll.u32 %s1888_s9, 9 }
 0x45a   : > { %s2092_s24 = scalar_lea.hbm %s2174_s8, %s1529_s13 }
 0x47d   : > { %830 = vadd.xlane.f32.xlu1 %v829_v5 }
 0x48e   : > { %1173 = vrot.lane.b32.xlu1 %v2006_v29, %s1815_s18 }
 0x4c0   : > { %v1000_v6 = vpop.xlane.xlu0 %999 }
 0x4c1   : > { %1713 = vrcp.f32 %v1000_v6 }
 0x4c4   : > { %v838_v7 = vpop.permute.xlu0 %837 }
 0x4c5   : > { %1615 = vmatpush3.msra.mxu1 %v838_v7 }
 0x4c6   : > { %1624 = vmatprep.subr.mxu1 %v1811_v2 }
 0x4ce   : > { %v1714_v8 = vpop.eup %1713 }
 0x4cf   : > { %v1002_v9 = vmul.f32 %v1714_v8, %v1708_v59 }
 0x4d1   : > { %v1168_v10 = vpop.xlane.xlu1 %1167  ;;  %1515 = vst.msk [vmem:[%s2026_s22 + $0x10] sm:$0xff] %vm581_vm2, %v1002_v9 }
 0x4d2   : > { %1715 = vrcp.f32 %v1168_v10 }
 0x4d5   : > { %v1006_v13 = vpop.permute.xlu1 %1005 }
 0x4df   : > { %v1716_v11 = vpop.eup %1715 }
 0x4e0   : > { %v1170_v12 = vmul.f32 %v1716_v11, %v1710_v63 }
 0x4e2   : > { %1519 = vst.msk [vmem:[%s2026_s22 + $0x18] sm:$0xff] %vm581_vm2, %v1170_v12 }
 0x506   : > { %v831_v14 = vpop.xlane.xlu1 %830 }
 0x507   : > { %1717 = vrcp.f32 %v831_v14 }
 0x50a   : > { %v1174_v17 = vpop.permute.xlu1 %1173 }
 0x514   : > { %v1718_v15 = vpop.eup %1717 }
 0x515   : > { %v833_v16 = vmul.f32 %v1718_v15, %v1712_v4 }
 0x517   : > { %1617 = vmatmul.mubr.msk.f32.vlgmr.msra.gmra.mxu1 %vm581_vm2, %v833_v16  ;;  %1511 = vst.msk [vmem:[%s2026_s22 + $0x8] sm:$0xff] %vm581_vm2, %v833_v16 }
 0x518   : > { %1625 = vmatpush3.msra.mxu1 %v1006_v13  ;;  %1626 = vmatprep.mubr.msk.f32.mxu1 %vm1812_vm1, %v1811_v2 }
 0x519   : > { %1634 = vmatprep.subr.mxu1 %v1811_v2 }
 0x51b   : > { %1627 = vmatmul.mubr.msk.f32.vlgmr.msra.gmra.mxu1 %vm581_vm2, %v1002_v9 }
 0x51c   : > { %1635 = vmatpush3.msra.mxu1 %v1174_v17  ;;  %1636 = vmatprep.mubr.msk.f32.mxu1 %vm1812_vm1, %v1811_v2 }
 0x51f   : > { %1637 = vmatmul.mubr.msk.f32.vlgmr.msra.gmra.mxu1 %vm581_vm2, %v1170_v12 }
 0x5d7   : > { %v909_v22 = vpop.f32.mrf.mxu1 }
 0x5d8   : > { %1250 = vrot.lane.b32.xlu0 %v909_v22, %s1816_s19 }
 0x5d9   : > { %v1618_v23 = vpop.f32.mrf.mxu1 }
 0x5db   : > { %v1077_v24 = vpop.f32.mrf.mxu1 }
 0x5dc   : > { %1254 = vrot.lane.b32.xlu1 %v1077_v24, %s1817_s20  ;;  %s1723_s20 = sshll.u32 %s1819_s10, 4  ;;  %s1724_s20 = int_to_ptr.vmem [resolvable:$false] %s1723_s20 }
 0x5dd   : > { %v1628_v25 = vpop.f32.mrf.mxu1  ;;  %s1725_s22 = scalar_lea.vmem %s1724_s20, 1024  ;;  %p1726_p0 = scmp.lt.s32.totalorder %s2086_s12, %s1724_s20 }
 0x5de   : > { %p1727_p1 = scmp.lt.s32.totalorder %s1725_s22, %s1719_s25 }
 0x5df   : > { %v1245_v26 = vpop.f32.mrf.mxu1 }
 0x5e0   : > { %1258 = vrot.lane.b32.xlu0 %v1245_v26, %s1818_s21  ;;  %p1728_p2 = por %p1727_p1, %p1726_p0 }
 0x5e1   : > { %v1638_v2 = vpop.f32.mrf.mxu1 }
 0x5e2   : > { %p1729_p3 = pnand %p1728_p2, %p1722_p13 }
 0x64a   : > { %v1251_v27 = vpop.permute.xlu0 %1250 }
 0x64b   : > { %v1261_v29 = vsel %vm581_vm2, %v2038_v46, %v1251_v27 }
 0x64e   : > { %v1255_v28 = vpop.permute.xlu1 %1254 }
 0x64f   : > { %v1263_v30 = vsel %vm1262_vm3, %v1261_v29, %v1255_v28 }
 0x652   : > { %v1259_v31 = vpop.permute.xlu0 %1258 }
 0x653   : > { %v1265_v32 = vsel %vm1264_vm4, %v1263_v30, %v1259_v31 }
 0x654   : > { %1648 = vmatmul.mubr.msk.f32.vlgmr.msra.gmra.mxu0 %vm353_vm0, %v1265_v32 }
 0x655   : > { %1732 = shalt.err (!%p1729_p3)
}
 0x656   : > { %s1733_s21 = scalar_lea.hbm %s2092_s24, 512  ;;  %s1737_s23 = scalar_lea.hbm %s2174_s8, 1024 }
 0x657   : > { %p1734_p4 = scmp.ne.s32.totalorder %s2092_s24, %s1733_s21  ;;  %p1738_p9 = scmp.lt.s32.totalorder %s2092_s24, %s2174_s8 }
 0x658   : > { %p1739_p10 = scmp.lt.s32.totalorder %s1737_s23, %s1733_s21 }
 0x659   : > { %p1735_p7 = pnand %p1734_p4, %p1905_p5 }
 0x65a   : > { %p1740_p11 = por %p1739_p10, %p1738_p9 }
 0x65b   : > { %p1736_p8 = pneg %p1735_p7 }
 0x65d   : > { %p1741_p12 = pnand %p1740_p11, %p1736_p8 }
 0x65f   : > { %1744 = shalt.err (!%p1741_p12)
}
 0x660   : > { %s1820_s25 = smov 128   ;;  %s2179_s20 = scalar_lea.sflag [#allocation5], %s2015_s17 }
 0x661   : > { %1651 = dma.vmem_to_hbm [thread:$0]  (%p1905_p5), %s2086_s12, 512, %s2092_s24, %s2179_s20, %s1820_s25, %s1820_s25, %s1816_s19  }
 0x662   : > { %s1498_s22 = sshll.u32 %s2015_s17, 3  ;;  %s1524_s26 = sshll.u32 %s1888_s9, 7 }
 0x663   : > { %s326_s13 = scalar_lea.vmem [#allocation2], %s1498_s22  ;;  %s2123_s10 = scalar_lea.hbm %s2173_s7, %s1524_s26 }
 0x664   : > { %s1363_s21 = sshll.u32 %s326_s13, 4  ;;  %s1345_s0 = scalar_lea.sflag [#allocation3], %s2015_s17  ;;  %s2125_s21 = int_to_ptr.vmem [resolvable:$true] %s1363_s21 }
 0x665   : > { %s1745_s19 = scalar_lea.vmem %s2125_s21, 128  ;;  %s1821_s9 = smov [#allocation2]  }
 0x666   : > { %p1746_p13 = scmp.ne.s32.totalorder %s2125_s21, %s1745_s19  ;;  %s1749_s12 = sshll.u32 %s1821_s9, 4  ;;  %s1750_s12 = int_to_ptr.vmem [resolvable:$false] %s1749_s12 }
 0x667   : > { %s1751_s24 = scalar_lea.vmem %s1750_s12, 256  ;;  %p1752_p2 = scmp.lt.s32.totalorder %s2125_s21, %s1750_s12 }
 0x668   : > { %p1747_p0 = pnand %p1746_p13, %p1905_p5  ;;  %p1753_p3 = scmp.lt.s32.totalorder %s1751_s24, %s1745_s19 }
 0x66a   : > { %p1748_p1 = pneg %p1747_p0  ;;  %p1754_p4 = por %p1753_p3, %p1752_p2 }
 0x66c   : > { %p1755_p7 = pnand %p1754_p4, %p1748_p1 }
 0x714   : > { %v1339_v33 = vpop.f32.mrf.mxu0 }
 0x715   : > { %1343 = vst.msk [vmem:[%s326_s13] sm:$0xff] %vm353_vm0, %v1339_v33 }
 0x716   : > { %v1649_v34 = vpop.f32.mrf.mxu0 }
 0x717   : > { %1758 = shalt.err (!%p1755_p7)
}
 0x718   : > { %s1759_s25 = scalar_lea.hbm %s2123_s10, 128  ;;  %s1763_s22 = scalar_lea.hbm %s2173_s7, 256 }
 0x719   : > { %p1760_p8 = scmp.ne.s32.totalorder %s2123_s10, %s1759_s25  ;;  %p1764_p11 = scmp.lt.s32.totalorder %s2123_s10, %s2173_s7 }
 0x71a   : > { %p1765_p12 = scmp.lt.s32.totalorder %s1763_s22, %s1759_s25 }
 0x71b   : > { %p1761_p9 = pnand %p1760_p8, %p1905_p5 }
 0x71c   : > { %p1766_p13 = por %p1765_p12, %p1764_p11 }
 0x71d   : > { %p1762_p10 = pneg %p1761_p9 }
 0x71f   : > { %p1767_p0 = pnand %p1766_p13, %p1762_p10 }
 0x721   : > { %1770 = shalt.err (!%p1767_p0)
}
 0x722   : > { %1650 = dma.vmem_to_hbm [thread:$0]  (%p1905_p5), %s2125_s21, 128, %s2123_s10, %s1345_s0  }
 0x723 PF: > { %p1661_p1 = scmp.ge.s32.totalorder %s1809_s30, 2  ;;  %s1391_s18 = sand.u32 1, %s1797_s27  }
 0x724   : > { %s1392_s23 = scalar_lea.sflag [#allocation3], %s1391_s18 }
 0x725   : > { %p1655_p2 = pnand %p1661_p1, %p1909_p6 }
 0x727   : > { %p1656_p3 = pneg %p1655_p2 }
 0x729   : > { %1788 = dma.done.wait (%p1656_p3), %s1392_s23, 128  }
 0x72a   : > { %1790 = vsyncadd (%p1656_p3), %s1392_s23, 4294967168  ;;  %s1401_s19 = scalar_lea.sflag [#allocation5], %s1391_s18 }
 0x72b   : > { %1792 = dma.done.wait (%p1656_p3), %s1401_s19, 512  }
 0x72c   : > { %1794 = vsyncadd (%p1656_p3), %s1401_s19, 4294966784  ;;  %p22_p5 = scmp.ge.s32.totalorder %s1892_s11, 4   ;;  %s2180_s27 = smov %s1801_s28 }
 0x72d   : > { %s2181_s28 = smov %s1805_s29  ;;  %s2182_s29 = smov %s1903_s14 }
 0x72e   : > { %s2183_s30 = smov %s1892_s11  ;;  %24 = sbr.rel (!%p22_p5) target bundleno = 7 (0x7), region = 109 }
 0x733   :  { %1406 = vsyncpa [#allocation3], 1 }
 0x734   :  { %1408 = vsyncpa [#allocation3 + $0x1], 1 }
 0x735   :  { %1409 = vsyncpa [#allocation5], 1 }
 0x736   :  { %1411 = vsyncpa [#allocation5 + $0x1], 1 }

</bundles_post_ra>
